<compile_context>
chip_gen: v6e
topology: v6e:2x2x1
jax: 0.10.0
libtpu: 0.0.40
codegen_flags: <defaults>
</compile_context>

<pallas_src>
import jax
import jax.numpy as jnp
from jax.experimental import pallas as pl
from jax.experimental.pallas import tpu as pltpu


def _dgc_kernel(adj_ref, y_ref, o_ref):
    """One output row tile.

    adj_ref : VMEM (k, tn, N)     bf16 row tile of every branch adjacency
    y_ref   : VMEM (k, N, out_f)  bf16 per-branch Y_i = x @ (softmax(alpha)_i * W_i), resident
    o_ref   : VMEM (tn, out_f)    f32 output tile
    """
    k = adj_ref.shape[0]
    # Static unroll over the (small) branch count; every matmul is a deep K=N contraction
    # with f32 accumulation on the MXU.  No casts, concats or scalar broadcasts in-kernel.
    acc = jnp.dot(adj_ref[0], y_ref[0], preferred_element_type=jnp.float32)
    for i in range(1, k):
        acc = acc + jnp.dot(adj_ref[i], y_ref[i], preferred_element_type=jnp.float32)
    o_ref[...] = acc.astype(o_ref.dtype)


def _vmem_limit_bytes():
    try:
        cap = pltpu.get_tpu_info().vmem_capacity_bytes
    except Exception:
        cap = 64 * 1024 * 1024  # conservative fallback: v7x per-TC VMEM
    # <= ~48 MiB on v7x (64 MiB physical), up to 96 MiB on v5e/v6e (128 MiB physical)
    return min((cap * 3) // 4, 96 * 1024 * 1024)


def _choose_row_tile(n_rows, fits, *, multiple=16, max_tile=512, target_steps=4):
    """Largest row tile that honestly fits the VMEM budget.

    Prefers multiples of 16 (bf16 sublane packing), tiles <= 512 rows, and at least
    `target_steps` grid steps (software pipelining + v7x 2-TC sharding) when N allows;
    falls back to multiples of 8, then to the full array.
    """
    if n_rows <= multiple:
        return n_rows
    cands = [t for t in range(multiple, n_rows + 1, multiple)
             if n_rows % t == 0 and fits(t)]
    if not cands:
        cands = [t for t in range(8, n_rows + 1, 8)
                 if n_rows % t == 0 and fits(t)]
    if not cands:
        # TODO(synk): column (K-dimension) tiling fallback for graphs whose adjacency row
        # slab cannot fit VMEM even at an 8-row tile.
        return n_rows
    good = [t for t in cands if t <= max_tile and n_rows // t >= target_steps]
    if good:
        return max(good)
    two = [t for t in cands if n_rows // t >= 2]
    if two:
        return max(two)
    return max(cands)


def dynamic_graph_convolution(x, adjs, w_stack, alpha, *, row_tile=None):
    """x: (N, in_f); adjs: (k, N, N); w_stack: (k, in_f, out_f); alpha: (k,) -> (N, out_f) f32."""
    k, N, _ = adjs.shape
    out_f = w_stack.shape[2]

    # --- tiny glue, hoisted out of the kernel (computed once, not per grid step) ---
    weights = jax.nn.softmax(alpha.astype(jnp.float32), axis=0)                  # (k,)
    # Y_i = x @ (softmax(alpha)_i * W_i): negligible FLOPs vs the adjacency matmuls, f32.
    y = jnp.einsum(
        "nf,kfo->kno",
        x.astype(jnp.float32),
        weights[:, None, None] * w_stack.astype(jnp.float32),
    )                                                                            # (k, N, out_f)
    y_bf16 = y.astype(jnp.bfloat16)
    adjs_bf16 = adjs.astype(jnp.bfloat16)        # halves HBM bytes on the dominant tensor

    vmem_limit = _vmem_limit_bytes()
    budget = int(vmem_limit * 0.85)              # headroom for compiler scratch

    bf16_isz = jnp.dtype(jnp.bfloat16).itemsize
    y_bytes = 2 * k * N * out_f * bf16_isz       # Y stack (grid-invariant, counted x2)

    def fits(t):
        adj_bytes = 2 * k * t * N * bf16_isz     # adjacency row tile, double-buffered
        out_bytes = 2 * t * out_f * 4            # f32 output tile, double-buffered
        acc_bytes = t * out_f * 4                # in-kernel f32 accumulator temporary
        return y_bytes + adj_bytes + out_bytes + acc_bytes <= budget

    if row_tile is None:
        row_tile = _choose_row_tile(N, fits)
    assert N % row_tile == 0, (N, row_tile)

    cost = pl.CostEstimate(
        flops=2 * k * N * N * out_f,
        transcendentals=0,
        bytes_accessed=k * N * N * bf16_isz + k * N * out_f * bf16_isz + N * out_f * 4,
    )

    return pl.pallas_call(
        _dgc_kernel,
        out_shape=jax.ShapeDtypeStruct((N, out_f), jnp.float32),
        grid=(N // row_tile,),
        in_specs=[
            pl.BlockSpec((k, row_tile, N), lambda r: (0, r, 0)),   # adj row tile, all branches
            pl.BlockSpec((k, N, out_f), lambda r: (0, 0, 0)),      # Y stack, resident
        ],
        out_specs=pl.BlockSpec((row_tile, out_f), lambda r: (r, 0)),
        compiler_params=pltpu.CompilerParams(
            dimension_semantics=("parallel",),   # independent row tiles -> v7x 2-TC sharding
            vmem_limit_bytes=vmem_limit,
        ),
        cost_estimate=cost,
    )(adjs_bf16, y_bf16)


def init_params(key, in_f, out_f, k):
    # xavier_normal_: std = sqrt(2 / (fan_in + fan_out))
    std = (2.0 / (in_f + out_f)) ** 0.5
    w_stack = std * jax.random.normal(key, (k, in_f, out_f), dtype=jnp.float32)
    alpha = jnp.ones((k,), dtype=jnp.float32) / k
    return w_stack, alpha


def reference(x, adjs, w_stack, alpha):
    weights = jax.nn.softmax(alpha, axis=0)
    outs = jnp.einsum("knm,mf,kfo->kno", adjs, x, w_stack)
    return jnp.einsum("k,kno->no", weights, outs)


if __name__ == "__main__":
    N, in_f, out_f, k = 16, 32, 32, 4

    key = jax.random.PRNGKey(0)
    kx, kadj, kw = jax.random.split(key, 3)

    x = jax.random.normal(kx, (N, in_f), dtype=jnp.float32)
    adjs = jax.random.normal(kadj, (k, N, N), dtype=jnp.float32)
    w_stack, alpha = init_params(kw, in_f, out_f, k)

    out = dynamic_graph_convolution(x, adjs, w_stack, alpha)
    out = jax.block_until_ready(out)

    ref = reference(x, adjs, w_stack, alpha)
    assert out.shape == (N, out_f)
    # adjacency and Y stream as bf16 (f32 MXU accumulation) -> bf16-level tolerance
    assert jnp.allclose(out, ref, atol=1e-1, rtol=5e-2), float(jnp.max(jnp.abs(out - ref)))

    print("KERNEL_OK")
</pallas_src>

<mosaic_0001>
module attributes {stable_mosaic.version = 11 : i64} {
  func.func @_dgc_kernel(%arg0: i32, %arg1: memref<4x16x16xbf16, #tpu.memory_space<vmem>>, %arg2: memref<4x16x32xbf16, #tpu.memory_space<vmem>>, %arg3: memref<16x32xf32, #tpu.memory_space<vmem>>) attributes {dimension_semantics = [#tpu.dimension_semantics<parallel>], iteration_bounds = array<i64: 1>, scalar_prefetch = 0 : i64, scratch_operands = 0 : i64, tpu.core_type = #tpu.core_type<tc>, window_params = [{transform_indices = @transform_0, window_bounds = array<i64: 4, 16, 16>}, {pipeline_mode = #tpu.pipeline_mode<synchronous>, transform_indices = @transform_1, window_bounds = array<i64: 4, 16, 32>}, {transform_indices = @transform_2, window_bounds = array<i64: 16, 32>}]} {
    %c0 = arith.constant 0 : index
    %c0_0 = arith.constant 0 : index
    %c0_1 = arith.constant 0 : index
    %0 = vector.load %arg1[%c0, %c0_0, %c0_1] : memref<4x16x16xbf16, #tpu.memory_space<vmem>>, vector<1x16x16xbf16>
    %1 = vector.shape_cast %0 : vector<1x16x16xbf16> to vector<16x16xbf16>
    %c0_2 = arith.constant 0 : index
    %c0_3 = arith.constant 0 : index
    %c0_4 = arith.constant 0 : index
    %2 = vector.load %arg2[%c0_2, %c0_3, %c0_4] : memref<4x16x32xbf16, #tpu.memory_space<vmem>>, vector<1x16x32xbf16>
    %3 = vector.shape_cast %2 : vector<1x16x32xbf16> to vector<16x32xbf16>
    %cst = arith.constant dense<0.000000e+00> : vector<16x32xf32>
    %4 = tpu.matmul %1, %3, %cst {dimension_numbers = #tpu.dot_dimension_numbers<[1], [0], [0], [1], [0, 0, 1, 1], [], []>} : vector<16x16xbf16>, vector<16x32xbf16>, vector<16x32xf32> -> vector<16x32xf32>
    %c1 = arith.constant 1 : index
    %c0_5 = arith.constant 0 : index
    %c0_6 = arith.constant 0 : index
    %5 = vector.load %arg1[%c1, %c0_5, %c0_6] : memref<4x16x16xbf16, #tpu.memory_space<vmem>>, vector<1x16x16xbf16>
    %6 = vector.shape_cast %5 : vector<1x16x16xbf16> to vector<16x16xbf16>
    %c1_7 = arith.constant 1 : index
    %c0_8 = arith.constant 0 : index
    %c0_9 = arith.constant 0 : index
    %7 = vector.load %arg2[%c1_7, %c0_8, %c0_9] : memref<4x16x32xbf16, #tpu.memory_space<vmem>>, vector<1x16x32xbf16>
    %8 = vector.shape_cast %7 : vector<1x16x32xbf16> to vector<16x32xbf16>
    %cst_10 = arith.constant dense<0.000000e+00> : vector<16x32xf32>
    %9 = tpu.matmul %6, %8, %cst_10 {dimension_numbers = #tpu.dot_dimension_numbers<[1], [0], [0], [1], [0, 0, 1, 1], [], []>} : vector<16x16xbf16>, vector<16x32xbf16>, vector<16x32xf32> -> vector<16x32xf32>
    %10 = arith.addf %4, %9 : vector<16x32xf32>
    %c2 = arith.constant 2 : index
    %c0_11 = arith.constant 0 : index
    %c0_12 = arith.constant 0 : index
    %11 = vector.load %arg1[%c2, %c0_11, %c0_12] : memref<4x16x16xbf16, #tpu.memory_space<vmem>>, vector<1x16x16xbf16>
    %12 = vector.shape_cast %11 : vector<1x16x16xbf16> to vector<16x16xbf16>
    %c2_13 = arith.constant 2 : index
    %c0_14 = arith.constant 0 : index
    %c0_15 = arith.constant 0 : index
    %13 = vector.load %arg2[%c2_13, %c0_14, %c0_15] : memref<4x16x32xbf16, #tpu.memory_space<vmem>>, vector<1x16x32xbf16>
    %14 = vector.shape_cast %13 : vector<1x16x32xbf16> to vector<16x32xbf16>
    %cst_16 = arith.constant dense<0.000000e+00> : vector<16x32xf32>
    %15 = tpu.matmul %12, %14, %cst_16 {dimension_numbers = #tpu.dot_dimension_numbers<[1], [0], [0], [1], [0, 0, 1, 1], [], []>} : vector<16x16xbf16>, vector<16x32xbf16>, vector<16x32xf32> -> vector<16x32xf32>
    %16 = arith.addf %10, %15 : vector<16x32xf32>
    %c3 = arith.constant 3 : index
    %c0_17 = arith.constant 0 : index
    %c0_18 = arith.constant 0 : index
    %17 = vector.load %arg1[%c3, %c0_17, %c0_18] : memref<4x16x16xbf16, #tpu.memory_space<vmem>>, vector<1x16x16xbf16>
    %18 = vector.shape_cast %17 : vector<1x16x16xbf16> to vector<16x16xbf16>
    %c3_19 = arith.constant 3 : index
    %c0_20 = arith.constant 0 : index
    %c0_21 = arith.constant 0 : index
    %19 = vector.load %arg2[%c3_19, %c0_20, %c0_21] : memref<4x16x32xbf16, #tpu.memory_space<vmem>>, vector<1x16x32xbf16>
    %20 = vector.shape_cast %19 : vector<1x16x32xbf16> to vector<16x32xbf16>
    %cst_22 = arith.constant dense<0.000000e+00> : vector<16x32xf32>
    %21 = tpu.matmul %18, %20, %cst_22 {dimension_numbers = #tpu.dot_dimension_numbers<[1], [0], [0], [1], [0, 0, 1, 1], [], []>} : vector<16x16xbf16>, vector<16x32xbf16>, vector<16x32xf32> -> vector<16x32xf32>
    %22 = arith.addf %16, %21 : vector<16x32xf32>
    %c0_23 = arith.constant 0 : index
    %c0_24 = arith.constant 0 : index
    %23 = vector.load %arg3[%c0_23, %c0_24] : memref<16x32xf32, #tpu.memory_space<vmem>>, vector<16x32xf32>
    tpu.vector_store %arg3[%c0_23, %c0_24], %22 {strides = array<i32>} : memref<16x32xf32, #tpu.memory_space<vmem>>, vector<16x32xf32>,
    return
  }
  func.func @transform_0(%arg0: i32) -> (i32, i32, i32) {
    %c0_i32 = arith.constant 0 : i32
    %c0_i32_0 = arith.constant 0 : i32
    %c0_i32_1 = arith.constant 0 : i32
    return %c0_i32, %arg0, %c0_i32_0 : i32, i32, i32
  }
  func.func @transform_1(%arg0: i32) -> (i32, i32, i32) {
    %c0_i32 = arith.constant 0 : i32
    %c0_i32_0 = arith.constant 0 : i32
    %c0_i32_1 = arith.constant 0 : i32
    %c0_i32_2 = arith.constant 0 : i32
    return %c0_i32, %c0_i32_0, %c0_i32_1 : i32, i32, i32
  }
  func.func @transform_2(%arg0: i32) -> (i32, i32) {
    %c0_i32 = arith.constant 0 : i32
    %c0_i32_0 = arith.constant 0 : i32
    return %arg0, %c0_i32 : i32, i32
  }
}

</mosaic_0001>

<bundles_post_ra>
// kernel: tpu_custom_call.1
= control target key start
LH: loop header
LB: loop body
LE: loop exit
PB: predicated region body
PF: predicated region fallthrough
CT: control target
= control target key end

     0   :  { %7 = vsyncpa [#allocation3], 0  ;;  %s477_s0 = inlined_call_operand.hbm [shape: bf16[4,16,16], index: 0, kind: input, shape index: {}]   ;;  %s478_s1 = inlined_call_operand.hbm [shape: bf16[4,16,32], index: 1, kind: input, shape index: {}]   ;;  %s479_s2 = inlined_call_operand.hbm [shape: f32[16,32], index: 2, kind: output, shape index: {}]  }
   0x1   :  { %8 = vsyncpa [#allocation6], 0 }
   0x2   :  { %9 = vsyncpa [#allocation4], 0  ;;  %s436_s9 = smov [#allocation2]  }
   0x3   :  { %s15_s10 = sshll.u32 %s436_s9, 4  ;;  %s16_s10 = int_to_ptr.vmem [resolvable:$true] %s15_s10 }
   0x4   :  { %s378_s11 = scalar_lea.vmem %s16_s10, 512  ;;  %p383_p1 = scmp.lt.s32.totalorder %s16_s10, %s16_s10 }
   0x5   :  { %p379_p0 = scmp.ne.s32.totalorder %s16_s10, %s378_s11  ;;  %p384_p2 = scmp.lt.s32.totalorder %s378_s11, %s378_s11 }
   0x7   :  { %p385_p3 = por %p384_p2, %p383_p1 }
   0x9   :  { %p386_p4 = pnand %p385_p3, %p379_p0 }
   0xb   :  { %389 = shalt.err (!%p386_p4)
}
   0xc   :  { %s437_s12 = smov 64   ;;  %s438_s13 = smov 4  }
   0xd   :  { %21 = dma.hbm_to_vmem [thread:$0]  %s477_s0, 512, %s16_s10, [#allocation3], %s437_s12, %s437_s12, %s438_s13  }
   0xe   :  { %s439_s16 = smov [#allocation5]  }
   0xf   :  { %s27_s17 = sshll.u32 %s439_s16, 4  ;;  %s28_s17 = int_to_ptr.vmem [resolvable:$true] %s27_s17 }
  0x10   :  { %s398_s18 = scalar_lea.vmem %s28_s17, 512  ;;  %p403_p6 = scmp.lt.s32.totalorder %s28_s17, %s28_s17 }
  0x11   :  { %p399_p5 = scmp.ne.s32.totalorder %s28_s17, %s398_s18  ;;  %p404_p7 = scmp.lt.s32.totalorder %s398_s18, %s398_s18 }
  0x13   :  { %p405_p8 = por %p404_p7, %p403_p6 }
  0x15   :  { %p406_p9 = pnand %p405_p8, %p399_p5 }
  0x17   :  { %409 = shalt.err (!%p406_p9)
}
  0x18   :  { %33 = dma.hbm_to_vmem [thread:$0]  %s478_s1, 512, %s28_s17, [#allocation6], %s437_s12, %s437_s12, %s438_s13  }
  0x19   :  { %430 = dma.done.wait [#allocation3], 512  }
  0x1a   :  { %431 = vsyncadd [#allocation3], 4294966784 }
  0x1b   :  { %432 = dma.done.wait [#allocation6], 512  }
  0x1c   :  { %433 = vsyncadd [#allocation6], 4294966784  ;;  %v440_v0 = vmov 0.0   ;;  %vm441_vm0 = vmmov 0   ;;  %v362_v1 = vld [vmem:[#allocation5 + $0x8] sm:$0xff]   ;;  %v363_v2 = vld [vmem:[#allocation5] sm:$0xff]  }
  0x1d   :  { %329 = vmatprep.subr.bf16.mxu0 %v440_v0  ;;  %335 = vmatprep.subr.bf16.mxu1 %v440_v0  ;;  %v364_v3 = vld [vmem:[#allocation2 + $0x8] sm:$0xff]   ;;  %vm62_vm1 = vcmask 130048   ;;  %v365_v4 = vld [vmem:[#allocation2] sm:$0xff]   ;;  %v366_v5 = vld [vmem:[#allocation5 + $0x10] sm:$0xff]   ;;  %vm288_vm2 = vcmask 261120   ;;  %s442_s0 = smov [#allocation7]  }
  0x1e   :  { %331 = vmatprep.mubr.msk.bf16.mxu0 %vm441_vm0, %v440_v0  ;;  %337 = vmatprep.mubr.msk.bf16.mxu1 %vm441_vm0, %v440_v0  ;;  %v367_v6 = vld [vmem:[#allocation5 + $0x18] sm:$0xff]   ;;  %v368_v7 = vld [vmem:[#allocation2 + $0x10] sm:$0xff]   ;;  %s296_s1 = sshll.u32 %s442_s0, 4  ;;  %s297_s1 = int_to_ptr.vmem [resolvable:$true] %s296_s1 }
  0x1f   :  { %330 = vmatpush3.bf16.msra.mxu0 %v362_v1  ;;  %336 = vmatpush3.bf16.msra.mxu1 %v363_v2  ;;  %v369_v8 = vld [vmem:[#allocation2 + $0x18] sm:$0xff]   ;;  %s410_s21 = scalar_lea.vmem %s297_s1, 256  ;;  %p415_p11 = scmp.lt.s32.totalorder %s297_s1, %s297_s1 }
  0x20   :  { %341 = vmatprep.subr.bf16.mxu0 %v440_v0  ;;  %347 = vmatprep.subr.bf16.mxu1 %v440_v0  ;;  %p411_p10 = scmp.ne.s32.totalorder %s297_s1, %s410_s21  ;;  %p416_p12 = scmp.lt.s32.totalorder %s410_s21, %s410_s21 }
  0x22   :  { %332 = vmatmul.mubr.msk.bf16.vlgmr.msra.gmra.mxu0 %vm62_vm1, %v364_v3  ;;  %338 = vmatmul.mubr.msk.bf16.vlgmr.msra.gmra.mxu1 %vm62_vm1, %v365_v4  ;;  %p417_p13 = por %p416_p12, %p415_p11 }
  0x23   :  { %342 = vmatpush3.bf16.msra.mxu0 %v366_v5  ;;  %348 = vmatpush3.bf16.msra.mxu1 %v367_v6 }
  0x24   :  { %343 = vmatprep.mubr.msk.bf16.mxu0 %vm441_vm0, %v440_v0  ;;  %349 = vmatprep.mubr.msk.bf16.mxu1 %vm441_vm0, %v440_v0  ;;  %p418_p0 = pnand %p417_p13, %p411_p10 }
  0x2a   :  { %344 = vmatmul.mubr.msk.bf16.vlgmr.msra.gmra.mxu0 %vm62_vm1, %v368_v7  ;;  %350 = vmatmul.mubr.msk.bf16.vlgmr.msra.gmra.mxu1 %vm62_vm1, %v369_v8 }
  0xe2   :  { %v100_v9 = vpop.f32.mrf.mxu0  ;;  %v155_v10 = vpop.f32.mrf.mxu1 }
  0xe3   :  { %v156_v16 = vadd.f32 %v155_v10, %v100_v9 }
  0xe4   :  { %v333_v11 = vpop.f32.mrf.mxu0  ;;  %v339_v12 = vpop.f32.mrf.mxu1 }
  0xe6   :  { %v103_v13 = vpop.f32.mrf.mxu0  ;;  %v158_v14 = vpop.f32.mrf.mxu1 }
  0xe7   :  { %v159_v22 = vadd.f32 %v158_v14, %v103_v13 }
  0xe8   :  { %v334_v15 = vpop.f32.mrf.mxu0  ;;  %v340_v17 = vpop.f32.mrf.mxu1 }
  0xea   :  { %v216_v18 = vpop.f32.mrf.mxu0  ;;  %v279_v20 = vpop.f32.mrf.mxu1 }
  0xeb   :  { %v223_v19 = vadd.f32 %v216_v18, %v156_v16 }
  0xec   :  { %v345_v21 = vpop.f32.mrf.mxu0  ;;  %v351_v24 = vpop.f32.mrf.mxu1 }
  0xed   :  { %v286_v23 = vadd.f32 %v279_v20, %v223_v19 }
  0xee   :  { %v219_v25 = vpop.f32.mrf.mxu0  ;;  %v282_v27 = vpop.f32.mrf.mxu1 }
  0xef   :  { %289 = vst.msk [vmem:[#allocation7] sm:$0xff] %vm288_vm2, %v286_v23  ;;  %v224_v26 = vadd.f32 %v219_v25, %v159_v22 }
  0xf0   :  { %v346_v28 = vpop.f32.mrf.mxu0  ;;  %v352_v30 = vpop.f32.mrf.mxu1 }
  0xf1   :  { %v287_v29 = vadd.f32 %v282_v27, %v224_v26 }
  0xf3   :  { %290 = vst.msk [vmem:[#allocation7 + $0x8] sm:$0xff] %vm288_vm2, %v287_v29 }
  0xf4   :  { %421 = shalt.err (!%p418_p0)
}
  0xf5   :  { %s443_s22 = smov 128   ;;  %s444_s23 = smov 8  }
  0xf6   :  { %302 = dma.vmem_to_hbm [thread:$0]  %s297_s1, 256, %s479_s2, [#allocation4], %s443_s22, %s443_s22, %s444_s23  }
  0xf7   :  { %434 = dma.done.wait [#allocation4], 256  }
  0xf8   :  { %435 = vsyncadd [#allocation4], 4294967040 }
  0xf9   :  { %306 = vsyncpa [#allocation3], 1 }
  0xfa   :  { %307 = vsyncpa [#allocation6], 1 }
  0xfb   :  { %308 = vsyncpa [#allocation4], 1 }

</bundles_post_ra>
